<compile_context>
chip_gen: v5e
topology: v5e:2x2
jax: 0.10.0
libtpu: 0.0.40
codegen_flags: <defaults>
</compile_context>

<pallas_src>
import functools

import jax
import jax.numpy as jnp
from jax.experimental import pallas as pl
from jax.experimental.pallas import tpu as pltpu

_LANES = 128
_TILE_BYTES_FAST_HBM = 4 * 1024 * 1024  # v6e / v7x
_TILE_BYTES_SLOW_HBM = 2 * 1024 * 1024  # v5e / unknown


def _clamp_kernel(x_ref, o_ref, *, min_val, max_val):
    x = x_ref[...]
    # torch.clamp(min=None) / (max=None) means "no bound on that side".
    if min_val is not None:
        x = jnp.maximum(x, jnp.asarray(min_val, dtype=x.dtype))
    if max_val is not None:
        x = jnp.minimum(x, jnp.asarray(max_val, dtype=x.dtype))
    o_ref[...] = x


def _sublane_pack(itemsize: int) -> int:
    # (8,128) tiling for 32-bit, (16,128) for 16-bit, (32,128) for 8-bit.
    return {4: 8, 2: 16, 1: 32}.get(itemsize, 8)


def _tpu_generation() -> int:
    """Best-effort TPU generation (4/5/6/7); 0 if it cannot be determined."""
    try:
        kind = jax.devices()[0].device_kind.lower()
    except Exception:  # pragma: no cover - defensive, e.g. interpret mode
        return 0
    for gen in (7, 6, 5, 4):
        if f"v{gen}" in kind:
            return gen
    return 0


def _tile_params():
    gen = _tpu_generation()
    target_bytes = _TILE_BYTES_FAST_HBM if gen >= 6 else _TILE_BYTES_SLOW_HBM
    num_tc = 2 if gen >= 7 else 1  # v7x has 2 TensorCores per chip
    return target_bytes, num_tc


def _pick_block_rows(rows: int, itemsize: int, target_bytes: int, num_tc: int) -> int:
    sub = _sublane_pack(itemsize)
    target = max(sub, (target_bytes // (_LANES * itemsize)) // sub * sub)
    if rows > target:
        return target                 # >= 2 grid steps; ragged tail is masked
    if num_tc >= 2 and rows >= 2 * sub:
        # Only split mid-size inputs when there are 2 TCs to feed (v7x);
        # keep the block a multiple of the sublane packing.
        half = -(-rows // 2)
        return -(-half // sub) * sub
    return rows                       # single full-extent block (always legal)


def _pick_block_elems(n: int, itemsize: int, target_bytes: int, num_tc: int) -> int:
    pack = _sublane_pack(itemsize) * _LANES
    target = max(pack, (target_bytes // itemsize) // pack * pack)
    if n > target:
        return target
    if num_tc >= 2 and n >= 2 * pack:
        half = -(-n // 2)
        return -(-half // pack) * pack
    return n


def _cost(n: int, itemsize: int) -> pl.CostEstimate:
    return pl.CostEstimate(flops=2 * n, bytes_accessed=2 * n * itemsize,
                           transcendentals=0)


def _clamp_2d(slab, min_val, max_val, block_rows, in_place):
    rows, lanes = slab.shape
    itemsize = jnp.dtype(slab.dtype).itemsize
    kernel = functools.partial(_clamp_kernel, min_val=min_val, max_val=max_val)
    return pl.pallas_call(
        kernel,
        out_shape=jax.ShapeDtypeStruct((rows, lanes), slab.dtype),
        grid_spec=pl.GridSpec(
            grid=(pl.cdiv(rows, block_rows),),
            in_specs=[pl.BlockSpec((block_rows, lanes), lambda i: (i, 0))],
            out_specs=pl.BlockSpec((block_rows, lanes), lambda i: (i, 0)),
        ),
        compiler_params=pltpu.CompilerParams(dimension_semantics=("parallel",)),
        cost_estimate=_cost(rows * lanes, itemsize),
        input_output_aliases={0: 0} if in_place else {},
    )(slab)


def _clamp_1d(flat, min_val, max_val, block_elems, in_place):
    (n,) = flat.shape
    itemsize = jnp.dtype(flat.dtype).itemsize
    kernel = functools.partial(_clamp_kernel, min_val=min_val, max_val=max_val)
    return pl.pallas_call(
        kernel,
        out_shape=jax.ShapeDtypeStruct((n,), flat.dtype),
        grid_spec=pl.GridSpec(
            grid=(pl.cdiv(n, block_elems),),
            in_specs=[pl.BlockSpec((block_elems,), lambda i: (i,))],
            out_specs=pl.BlockSpec((block_elems,), lambda i: (i,)),
        ),
        compiler_params=pltpu.CompilerParams(dimension_semantics=("parallel",)),
        cost_estimate=_cost(n, itemsize),
        input_output_aliases={0: 0} if in_place else {},
    )(flat)


@functools.partial(jax.jit, static_argnums=(1, 2, 3))
def _clamp_jit(x, min_val, max_val, in_place):
    orig_shape = x.shape
    n = x.size
    itemsize = jnp.dtype(x.dtype).itemsize
    target_bytes, num_tc = _tile_params()

    if n % _LANES == 0:
        # Fast path: free flat reshape into a lane-dense (rows, 128) slab.
        rows = n // _LANES
        slab = x.reshape(rows, _LANES)
        out = _clamp_2d(slab, min_val, max_val,
                        _pick_block_rows(rows, itemsize, target_bytes, num_tc),
                        in_place)
        return out.reshape(orig_shape)

    # Ragged path: run directly on the unpadded flat view. The cdiv grid's
    # final partial block is masked by Pallas (value-safe for clamp), so this
    # costs exactly one HBM read + one write — no pad / slice copies.
    flat = x.reshape(-1)
    out = _clamp_1d(flat, min_val, max_val,
                    _pick_block_elems(n, itemsize, target_bytes, num_tc),
                    in_place)
    return out.reshape(orig_shape)


def clamp(x, min_val=-1.0, max_val=1.0, in_place=False):
    """Clamp all elements of `x` into [min_val, max_val] (None = unbounded).

    Matches torch.Tensor.clamp(min=..., max=...). Notes:
      * Float bounds applied to integer inputs are truncated to the input dtype.
      * (None, None) is a no-op and returns the input (torch.clamp raises).
      * in_place=True aliases the output onto the input buffer; only useful if
        the caller donates `x` at its own jit boundary, otherwise XLA inserts a
        defensive copy.
    """
    x = jnp.asarray(x)
    if min_val is None and max_val is None:
        return x                      # no-op configuration: skip HBM round-trip
    if x.size == 0:
        return x
    return _clamp_jit(x, min_val, max_val, bool(in_place))


if __name__ == "__main__":
    key = jax.random.PRNGKey(0)
    # Small input consistent with "any shape" module: (2, 4, 16, 16).
    x = jax.random.normal(key, (2, 4, 16, 16), dtype=jnp.float32) * 3.0

    # Default Clamp(min=-1.0, max=1.0) — 128-aligned 2-D fast path.
    out = jax.block_until_ready(clamp(x, min_val=-1.0, max_val=1.0))
    ref = jnp.clip(x, -1.0, 1.0)
    assert out.shape == x.shape and out.dtype == x.dtype
    assert jnp.allclose(out, ref), "mismatch vs reference clamp"

    # Docstring example: Clamp(min=-1, max=2) on a 2x3 tensor (ragged 1-D path).
    ex = jnp.array([[-2.0, -1.0, 0.0], [1.0, 2.0, 3.0]], dtype=jnp.float32)
    out2 = jax.block_until_ready(clamp(ex, min_val=-1.0, max_val=2.0))
    expected = jnp.array([[-1.0, -1.0, 0.0], [1.0, 2.0, 2.0]], dtype=jnp.float32)
    assert jnp.allclose(out2, expected)

    # Larger ragged size (not a multiple of 128) exercising the masked tail.
    y = jax.random.normal(jax.random.PRNGKey(1), (2, 8, 131), dtype=jnp.float32) * 2.0
    out3 = jax.block_until_ready(clamp(y, min_val=-1.0, max_val=1.0))
    assert out3.shape == y.shape
    assert jnp.allclose(out3, jnp.clip(y, -1.0, 1.0))

    # One-sided clamps behave like torch.clamp(max=...) / torch.clamp(min=...).
    out4 = jax.block_until_ready(clamp(x, min_val=None, max_val=0.5))
    assert jnp.allclose(out4, jnp.minimum(x, 0.5))
    out5 = jax.block_until_ready(clamp(x, min_val=-0.25, max_val=None))
    assert jnp.allclose(out5, jnp.maximum(x, -0.25))

    # bf16 coverage (16-bit sublane packing).
    xb = x.astype(jnp.bfloat16)
    out6 = jax.block_until_ready(clamp(xb, min_val=-1.0, max_val=1.0))
    assert out6.dtype == jnp.bfloat16
    assert jnp.allclose(out6.astype(jnp.float32),
                        jnp.clip(xb.astype(jnp.float32), -1.0, 1.0))

    # No-op configuration returns the input unchanged without a kernel launch.
    out7 = jax.block_until_ready(clamp(x, min_val=None, max_val=None))
    assert jnp.allclose(out7, x)

    print("KERNEL_OK")
</pallas_src>

<mosaic_0001>
module attributes {stable_mosaic.version = 11 : i64} {
  func.func @_clamp_kernel(%arg0: i32, %arg1: memref<16x128xf32, #tpu.memory_space<vmem>>, %arg2: memref<16x128xf32, #tpu.memory_space<vmem>>) attributes {dimension_semantics = [#tpu.dimension_semantics<parallel>], iteration_bounds = array<i64: 1>, scalar_prefetch = 0 : i64, scratch_operands = 0 : i64, tpu.core_type = #tpu.core_type<tc>, window_params = [{transform_indices = @transform_0, window_bounds = array<i64: 16, 128>}, {transform_indices = @transform_1, window_bounds = array<i64: 16, 128>}]} {
    %c0 = arith.constant 0 : index
    %c0_0 = arith.constant 0 : index
    %0 = vector.load %arg1[%c0, %c0_0] : memref<16x128xf32, #tpu.memory_space<vmem>>, vector<16x128xf32>
    %cst = arith.constant -1.000000e+00 : f32
    %1 = vector.broadcast %cst : f32 to vector<16x128xf32>
    %2 = arith.maximumf %0, %1 : vector<16x128xf32>
    %cst_1 = arith.constant 1.000000e+00 : f32
    %3 = vector.broadcast %cst_1 : f32 to vector<16x128xf32>
    %4 = arith.minimumf %2, %3 : vector<16x128xf32>
    %c0_2 = arith.constant 0 : index
    %c0_3 = arith.constant 0 : index
    %5 = vector.load %arg2[%c0_2, %c0_3] : memref<16x128xf32, #tpu.memory_space<vmem>>, vector<16x128xf32>
    tpu.vector_store %arg2[%c0_2, %c0_3], %4 {strides = array<i32>} : memref<16x128xf32, #tpu.memory_space<vmem>>, vector<16x128xf32>,
    return
  }
  func.func @transform_0(%arg0: i32) -> (i32, i32) {
    %c0_i32 = arith.constant 0 : i32
    %c0_i32_0 = arith.constant 0 : i32
    return %arg0, %c0_i32 : i32, i32
  }
  func.func @transform_1(%arg0: i32) -> (i32, i32) {
    %c0_i32 = arith.constant 0 : i32
    %c0_i32_0 = arith.constant 0 : i32
    return %arg0, %c0_i32 : i32, i32
  }
}

</mosaic_0001>

<bundles_post_ra>
// kernel: _clamp_jit.1
= control target key start
LH: loop header
LB: loop body
LE: loop exit
PB: predicated region body
PF: predicated region fallthrough
CT: control target
= control target key end

     0   :  { %s44_s0 = inlined_call_operand.vmem [shape: f32[16,128], index: 0, kind: input, shape index: {}]   ;;  %s45_s1 = inlined_call_operand.vmem [shape: f32[16,128], index: 1, kind: output, shape index: {}]  }
   0x1   :  { %v8_v0 = vld [vmem:[%s44_s0] sm:$0xff]  ;;  %v9_v1 = vld [vmem:[%s44_s0 + $0x8] sm:$0xff] }
   0x2   :  { %v20_v2 = vclamps-f32 %v8_v0, 1.0  ;;  %v21_v3 = vclamps-f32 %v9_v1, 1.0 }
   0x4   :  { %14 = vst [vmem:[%s45_s1] sm:$0xff] %v20_v2 }
   0x5   :  { %15 = vst [vmem:[%s45_s1 + $0x8] sm:$0xff] %v21_v3 }

</bundles_post_ra>
